<compile_context>
chip_gen: v7x
topology: tpu7x:2x2x1
jax: 0.10.0
libtpu: 0.0.40
codegen_flags: <defaults>
</compile_context>

<pallas_src>
import functools

import jax
import jax.numpy as jnp
from jax import lax
from jax.experimental import pallas as pl
from jax.experimental.pallas import tpu as pltpu

EPS = 1e-5  # nn.LayerNorm default
_MiB = 1024 * 1024


def _prenorm_linear_kernel(x_ref, g_ref, b_ref, w_ref, wb_ref, o_ref, y_sc):
    # x_ref : (bm, D)     rows = flattened (batch*seq), possibly zero-padded
    # g_ref : (1, D)      LayerNorm weight (gamma)
    # b_ref : (1, D)      LayerNorm bias   (beta)
    # w_ref : (D, bn)     Dout-tile of fn's Linear weight (already W^T)
    # wb_ref: (1, bn)     Dout-tile of fn's Linear bias
    # o_ref : (bm, bn)
    # y_sc  : (bm, D)     VMEM scratch: LN output in the matmul dtype

    # LayerNorm is identical for every Dout tile of the same row tile:
    # compute it only once (Dout axis is the inner, "arbitrary" grid axis).
    @pl.when(pl.program_id(1) == 0)
    def _():
        x = x_ref[...].astype(jnp.float32)
        mean = jnp.mean(x, axis=-1, keepdims=True)
        centered = x - mean
        var = jnp.mean(centered * centered, axis=-1, keepdims=True)  # biased, as in PyTorch
        xhat = centered * lax.rsqrt(var + EPS)
        y = xhat * g_ref[...].astype(jnp.float32) + b_ref[...].astype(jnp.float32)
        y_sc[...] = y.astype(y_sc.dtype)

    # fn = Linear:  y @ W^T + b.  MXU consumes the weight in its native dtype
    # (bf16 stays bf16); accumulation is f32 via preferred_element_type.
    out = jnp.dot(y_sc[...], w_ref[...], preferred_element_type=jnp.float32)
    out = out + wb_ref[...].astype(jnp.float32)
    o_ref[...] = out.astype(o_ref.dtype)


def _round_up(n, m):
    return ((n + m - 1) // m) * m


def _row_multiple(dtype):
    # Sub-32-bit dtypes pack along sublanes: 8 rows for f32, 16 for bf16,
    # 32 for int8/fp8.
    itemsize = jnp.dtype(dtype).itemsize
    return max(8, 32 // itemsize)


@functools.lru_cache(maxsize=1)
def _vmem_capacity_bytes():
    """Physical VMEM of this chip; conservative v7x default if unqueryable."""
    try:
        info = pltpu.get_tpu_info()
        cap = getattr(info, "vmem_capacity_bytes", None)
        if cap:
            return int(cap)
    except Exception:
        pass
    return 64 * _MiB


def _choose_tiles(N, D, dout_pad, x_dtype, w_dtype, out_dtype, scratch_dtype,
                  weight_buffers, block_rows, block_out):
    """Pick (bm, bn, vmem_limit) so the working set fits the per-chip budget.

    bm is the main perf lever (weight-HBM traffic scales ~1/bm), so for each
    legal bn we compute the largest bm that fits and keep the combination that
    maximizes bm (i.e. shrink bn before shrinking bm).
    """
    cap = _vmem_capacity_bytes()
    # ~100 MiB on 128 MiB parts (v5e/v6e), ~51 MiB on v7x's 64 MiB.
    vmem_limit = min(int(cap * 0.80), 100 * _MiB)
    budget = vmem_limit - 4 * _MiB  # headroom for compiler-internal scratch

    x_it = jnp.dtype(x_dtype).itemsize
    w_it = jnp.dtype(w_dtype).itemsize
    o_it = jnp.dtype(out_dtype).itemsize
    s_it = jnp.dtype(scratch_dtype).itemsize
    row_mult = _row_multiple(x_dtype)

    def usage(bm, bn):
        return (2 * bm * D * x_it                   # double-buffered x tile
                + weight_buffers * D * bn * w_it    # W^T tile buffers
                + bm * D * s_it                     # LN-output scratch
                + 2 * bm * bn * o_it                # double-buffered out tile
                + 8 * D * 4 + 8 * bn * 4)           # gamma/beta/bias (tiny)

    bm_hi = min(2048, _round_up(N, row_mult))       # no point tiling past the row count

    if block_out is not None and dout_pad % block_out == 0:
        bn_candidates = [block_out]
    else:
        bn_candidates = [bn for bn in (512, 384, 256, 128) if dout_pad % bn == 0]
        if not bn_candidates:
            bn_candidates = [dout_pad]

    best = None
    for bn in bn_candidates:
        if block_rows is not None:
            bm = min(_round_up(block_rows, row_mult), bm_hi)
        else:
            bm = bm_hi
            while bm > row_mult and usage(bm, bn) > budget:
                bm -= row_mult
        if usage(bm, bn) > budget:
            continue
        if best is None or bm > best[0] or (bm == best[0] and bn > best[1]):
            best = (bm, bn)
    if best is None:
        # Smallest legal tiles; let the compiler report if even that misses.
        best = (row_mult, bn_candidates[-1])
    bm, bn = best

    # Megacore guard (v7x has 2 TensorCores): if a single row tile would cover
    # everything but the rows could be split, halve the tile so the 'parallel'
    # row axis gives both cores work.  One extra grid step is ~0.35 µs, so this
    # is harmless on single-core chips.
    if block_rows is None and pl.cdiv(N, bm) < 2 and N > row_mult:
        bm = max(row_mult, _round_up(pl.cdiv(N, 2), row_mult))

    return bm, bn, vmem_limit


@functools.partial(
    jax.jit,
    static_argnames=("block_rows", "block_out", "weight_buffers", "use_bf16_matmul"))
def prenorm_linear(x, gamma, beta, w_t, w_bias, *, block_rows=None, block_out=None,
                   weight_buffers=2, use_bf16_matmul=False):
    """PreNorm with fn = Linear.  x: (B, S, D) -> (B, S, Dout)."""
    B, S, D = x.shape
    Dout = w_t.shape[1]
    N = B * S

    # --- Dout padding: keep the output lane-dense (multiple of 128). ---------
    dout_pad = _round_up(Dout, 128)

    # Optional bf16 matmul path (halves weight HBM traffic and LN scratch,
    # keeps f32 accumulation).  Off by default: it changes numerics slightly.
    if use_bf16_matmul and w_t.dtype == jnp.float32:
        w_mm = w_t.astype(jnp.bfloat16)
    else:
        w_mm = w_t
    if dout_pad != Dout:
        w_mm = jnp.pad(w_mm, ((0, 0), (0, dout_pad - Dout)))
        wb = jnp.pad(w_bias, (0, dout_pad - Dout))
    else:
        wb = w_bias
    scratch_dtype = w_mm.dtype

    # --- Tile selection (VMEM-budget aware, per-chip). -----------------------
    bm, bn, vmem_limit = _choose_tiles(
        N, D, dout_pad, x.dtype, w_mm.dtype, x.dtype, scratch_dtype,
        weight_buffers, block_rows, block_out)

    n_pad = _round_up(N, bm)
    n_row_tiles = n_pad // bm
    n_out_tiles = dout_pad // bn

    x2 = x.reshape(N, D)
    if n_pad != N:
        # Pad with zeros; padded rows produce finite garbage and are sliced off.
        x2 = jnp.pad(x2, ((0, n_pad - N), (0, 0)))
    g2 = gamma.reshape(1, D)
    b2 = beta.reshape(1, D)
    wb2 = wb.reshape(1, dout_pad)

    # Optionally deepen only the weight pipeline (its block index changes every
    # inner grid step); default stays at the standard double buffer.
    w_spec_kwargs = {}
    if weight_buffers > 2:
        w_spec_kwargs["pipeline_mode"] = pl.Buffered(weight_buffers)

    x_it = jnp.dtype(x.dtype).itemsize
    w_it = jnp.dtype(w_mm.dtype).itemsize
    o_it = jnp.dtype(x.dtype).itemsize
    cost = pl.CostEstimate(
        flops=int(2 * n_pad * D * dout_pad + 10 * n_pad * D),
        transcendentals=int(n_pad),  # one rsqrt per row
        bytes_accessed=int(n_pad * D * x_it
                           + n_row_tiles * D * dout_pad * w_it  # W^T re-streamed per row tile
                           + n_pad * dout_pad * o_it),
    )

    out2 = pl.pallas_call(
        _prenorm_linear_kernel,
        out_shape=jax.ShapeDtypeStruct((n_pad, dout_pad), x.dtype),
        grid_spec=pltpu.PrefetchScalarGridSpec(
            num_scalar_prefetch=0,
            grid=(n_row_tiles, n_out_tiles),
            in_specs=[
                pl.BlockSpec((bm, D), lambda i, j: (i, 0)),                  # x rows
                pl.BlockSpec((1, D), lambda i, j: (0, 0)),                   # gamma
                pl.BlockSpec((1, D), lambda i, j: (0, 0)),                   # beta
                pl.BlockSpec((D, bn), lambda i, j: (0, j), **w_spec_kwargs),  # W^T Dout-tile
                pl.BlockSpec((1, bn), lambda i, j: (0, j)),                  # linear bias tile
            ],
            out_specs=pl.BlockSpec((bm, bn), lambda i, j: (i, j)),
            scratch_shapes=[pltpu.VMEM((bm, D), scratch_dtype)],             # cached LN output
        ),
        compiler_params=pltpu.CompilerParams(
            # rows: embarrassingly parallel (shards across v7x's 2 TensorCores);
            # Dout: "arbitrary" because the LN scratch is reused across it.
            dimension_semantics=("parallel", "arbitrary"),
            vmem_limit_bytes=vmem_limit,
        ),
        cost_estimate=cost,
    )(x2, g2, b2, w_mm, wb2)

    return out2[:N, :Dout].reshape(B, S, Dout)


def _reference(x, gamma, beta, w_t, w_bias):
    # Mimics the kernel's dtype behaviour: LN in f32, LN output cast to the
    # weight dtype, matmul accumulated in f32, output cast to x.dtype.
    xf = x.astype(jnp.float32)
    mean = jnp.mean(xf, axis=-1, keepdims=True)
    var = jnp.mean((xf - mean) ** 2, axis=-1, keepdims=True)
    y = (xf - mean) * lax.rsqrt(var + EPS) * gamma + beta
    y = y.astype(w_t.dtype).astype(jnp.float32)
    out = y @ w_t.astype(jnp.float32) + w_bias
    return out.astype(x.dtype)


def _make_inputs(key, B, S, D, Dout=None, dtype=jnp.float32):
    Dout = D if Dout is None else Dout
    k_x, k_g, k_b, k_w, k_wb = jax.random.split(key, 5)
    x = jax.random.normal(k_x, (B, S, D), dtype=jnp.float32).astype(dtype)
    gamma = 1.0 + 0.1 * jax.random.normal(k_g, (D,), dtype=jnp.float32)
    beta = 0.1 * jax.random.normal(k_b, (D,), dtype=jnp.float32)
    w = jax.random.normal(k_w, (Dout, D), dtype=jnp.float32) / jnp.sqrt(D)
    w_t = w.T.astype(dtype)
    w_bias = 0.1 * jax.random.normal(k_wb, (Dout,), dtype=jnp.float32)
    return x, gamma, beta, w_t, w_bias


if __name__ == "__main__":
    key = jax.random.PRNGKey(0)
    k1, k2, k3, k4, k5 = jax.random.split(key, 5)

    # 1) Main small-shape check: batch=2, seq=8, hidden=32 (f32, tight tol).
    B, S, D = 2, 8, 32
    x, g, b, w, wb = _make_inputs(k1, B, S, D, dtype=jnp.float32)
    out = jax.block_until_ready(prenorm_linear(x, g, b, w, wb))
    ref = _reference(x, g, b, w, wb)
    assert out.shape == (B, S, D)
    assert jnp.allclose(out, ref, atol=1e-4, rtol=1e-4), "mismatch vs reference (f32)"

    # 2) Row-padding path (B*S not a multiple of 8).
    x, g, b, w, wb = _make_inputs(k2, 3, 7, 32, dtype=jnp.float32)
    out = jax.block_until_ready(prenorm_linear(x, g, b, w, wb))
    ref = _reference(x, g, b, w, wb)
    assert out.shape == (3, 7, 32)
    assert jnp.allclose(out, ref, atol=1e-4, rtol=1e-4), "mismatch vs reference (row pad)"

    # 3) Dout-padding path (Dout=48 -> padded to 128, sliced back).
    x, g, b, w, wb = _make_inputs(k3, 2, 8, 32, Dout=48, dtype=jnp.float32)
    out = jax.block_until_ready(prenorm_linear(x, g, b, w, wb))
    ref = _reference(x, g, b, w, wb)
    assert out.shape == (2, 8, 48)
    assert jnp.allclose(out, ref, atol=1e-4, rtol=1e-4), "mismatch vs reference (Dout pad)"

    # 4) Multi-Dout-tile path (exercises LN-scratch reuse across the j axis).
    x, g, b, w, wb = _make_inputs(k4, 2, 64, 128, Dout=256, dtype=jnp.float32)
    out = jax.block_until_ready(prenorm_linear(x, g, b, w, wb, block_out=128))
    ref = _reference(x, g, b, w, wb)
    assert out.shape == (2, 64, 256)
    assert jnp.allclose(out, ref, atol=5e-4, rtol=5e-4), "mismatch vs reference (Dout tiles)"

    # 5) bf16 path (LN stats in f32, bf16 MXU matmul with f32 accumulation).
    x, g, b, w, wb = _make_inputs(k5, 2, 8, 32, dtype=jnp.bfloat16)
    out = jax.block_until_ready(prenorm_linear(x, g, b, w, wb))
    ref = _reference(x, g, b, w, wb)
    assert out.shape == (2, 8, 32)
    assert jnp.allclose(out.astype(jnp.float32), ref.astype(jnp.float32),
                        atol=2e-2, rtol=2e-2), "mismatch vs reference (bf16)"

    print("KERNEL_OK")
</pallas_src>

<mosaic_0001>
module attributes {stable_mosaic.version = 11 : i64} {
  func.func @_prenorm_linear_kernel(%arg0: i32, %arg1: i32, %arg2: memref<8x32xf32, #tpu.memory_space<vmem>>, %arg3: memref<1x32xf32, #tpu.memory_space<vmem>>, %arg4: memref<1x32xf32, #tpu.memory_space<vmem>>, %arg5: memref<32x128xf32, #tpu.memory_space<vmem>>, %arg6: memref<1x128xf32, #tpu.memory_space<vmem>>, %arg7: memref<8x128xf32, #tpu.memory_space<vmem>>, %arg8: memref<8x32xf32, #tpu.memory_space<vmem>>) attributes {dimension_semantics = [#tpu.dimension_semantics<parallel>, #tpu.dimension_semantics<arbitrary>], iteration_bounds = array<i64: 2, 1>, scalar_prefetch = 0 : i64, scratch_operands = 1 : i64, tpu.core_type = #tpu.core_type<tc>, window_params = [{transform_indices = @transform_0, window_bounds = array<i64: 8, 32>}, {pipeline_mode = #tpu.pipeline_mode<synchronous>, transform_indices = @transform_1, window_bounds = array<i64: 1, 32>}, {pipeline_mode = #tpu.pipeline_mode<synchronous>, transform_indices = @transform_2, window_bounds = array<i64: 1, 32>}, {transform_indices = @transform_3, window_bounds = array<i64: 32, 128>}, {transform_indices = @transform_4, window_bounds = array<i64: 1, 128>}, {transform_indices = @transform_5, window_bounds = array<i64: 8, 128>}]} {
    %c0_i32 = arith.constant 0 : i32
    %0 = arith.cmpi eq, %arg1, %c0_i32 : i32
    %1 = arith.extui %0 : i1 to i32
    %c0_i32_0 = arith.constant 0 : i32
    %2 = arith.cmpi ne, %1, %c0_i32_0 : i32
    scf.if %2 {
      %c0_8 = arith.constant 0 : index
      %c0_9 = arith.constant 0 : index
      %10 = vector.load %arg2[%c0_8, %c0_9] : memref<8x32xf32, #tpu.memory_space<vmem>>, vector<8x32xf32>
      %cst_10 = arith.constant dense<0.000000e+00> : vector<8xf32>
      %11 = vector.multi_reduction <add>, %10, %cst_10 [1] : vector<8x32xf32> to vector<8xf32>
      %12 = vector.shape_cast %11 : vector<8xf32> to vector<8x1xf32>
      %cst_11 = arith.constant 3.200000e+01 : f32
      %13 = vector.broadcast %cst_11 : f32 to vector<8x1xf32>
      %14 = arith.divf %12, %13 : vector<8x1xf32>
      %15 = vector.broadcast %14 : vector<8x1xf32> to vector<8x32xf32>
      %16 = arith.subf %10, %15 : vector<8x32xf32>
      %17 = arith.mulf %16, %16 : vector<8x32xf32>
      %cst_12 = arith.constant dense<0.000000e+00> : vector<8xf32>
      %18 = vector.multi_reduction <add>, %17, %cst_12 [1] : vector<8x32xf32> to vector<8xf32>
      %19 = vector.shape_cast %18 : vector<8xf32> to vector<8x1xf32>
      %cst_13 = arith.constant 3.200000e+01 : f32
      %20 = vector.broadcast %cst_13 : f32 to vector<8x1xf32>
      %21 = arith.divf %19, %20 : vector<8x1xf32>
      %cst_14 = arith.constant 9.99999974E-6 : f32
      %22 = vector.broadcast %cst_14 : f32 to vector<8x1xf32>
      %23 = arith.addf %21, %22 : vector<8x1xf32>
      %24 = math.rsqrt %23 : vector<8x1xf32>
      %25 = vector.broadcast %24 : vector<8x1xf32> to vector<8x32xf32>
      %26 = arith.mulf %16, %25 : vector<8x32xf32>
      %c0_15 = arith.constant 0 : index
      %c0_16 = arith.constant 0 : index
      %27 = vector.load %arg3[%c0_15, %c0_16] : memref<1x32xf32, #tpu.memory_space<vmem>>, vector<1x32xf32>
      %28 = vector.broadcast %27 : vector<1x32xf32> to vector<8x32xf32>
      %29 = arith.mulf %26, %28 : vector<8x32xf32>
      %c0_17 = arith.constant 0 : index
      %c0_18 = arith.constant 0 : index
      %30 = vector.load %arg4[%c0_17, %c0_18] : memref<1x32xf32, #tpu.memory_space<vmem>>, vector<1x32xf32>
      %31 = vector.broadcast %30 : vector<1x32xf32> to vector<8x32xf32>
      %32 = arith.addf %29, %31 : vector<8x32xf32>
      %c0_19 = arith.constant 0 : index
      %c0_20 = arith.constant 0 : index
      %33 = vector.load %arg8[%c0_19, %c0_20] : memref<8x32xf32, #tpu.memory_space<vmem>>, vector<8x32xf32>
      tpu.vector_store %arg8[%c0_19, %c0_20], %32 {strides = array<i32>} : memref<8x32xf32, #tpu.memory_space<vmem>>, vector<8x32xf32>,
    } else {
    }
    %c0 = arith.constant 0 : index
    %c0_1 = arith.constant 0 : index
    %3 = vector.load %arg8[%c0, %c0_1] : memref<8x32xf32, #tpu.memory_space<vmem>>, vector<8x32xf32>
    %c0_2 = arith.constant 0 : index
    %c0_3 = arith.constant 0 : index
    %4 = vector.load %arg5[%c0_2, %c0_3] : memref<32x128xf32, #tpu.memory_space<vmem>>, vector<32x128xf32>
    %cst = arith.constant dense<0.000000e+00> : vector<8x128xf32>
    %5 = tpu.matmul %3, %4, %cst {dimension_numbers = #tpu.dot_dimension_numbers<[1], [0], [0], [1], [0, 0, 1, 1], [], []>} : vector<8x32xf32>, vector<32x128xf32>, vector<8x128xf32> -> vector<8x128xf32>
    %c0_4 = arith.constant 0 : index
    %c0_5 = arith.constant 0 : index
    %6 = vector.load %arg6[%c0_4, %c0_5] : memref<1x128xf32, #tpu.memory_space<vmem>>, vector<1x128xf32>
    %7 = vector.broadcast %6 : vector<1x128xf32> to vector<8x128xf32>
    %8 = arith.addf %5, %7 : vector<8x128xf32>
    %c0_6 = arith.constant 0 : index
    %c0_7 = arith.constant 0 : index
    %9 = vector.load %arg7[%c0_6, %c0_7] : memref<8x128xf32, #tpu.memory_space<vmem>>, vector<8x128xf32>
    tpu.vector_store %arg7[%c0_6, %c0_7], %8 {strides = array<i32>} : memref<8x128xf32, #tpu.memory_space<vmem>>, vector<8x128xf32>,
    return
  }
  func.func @transform_0(%arg0: i32, %arg1: i32) -> (i32, i32) {
    %c0_i32 = arith.constant 0 : i32
    %c0_i32_0 = arith.constant 0 : i32
    return %arg0, %c0_i32 : i32, i32
  }
  func.func @transform_1(%arg0: i32, %arg1: i32) -> (i32, i32) {
    %c0_i32 = arith.constant 0 : i32
    %c0_i32_0 = arith.constant 0 : i32
    %c0_i32_1 = arith.constant 0 : i32
    return %c0_i32, %c0_i32_0 : i32, i32
  }
  func.func @transform_2(%arg0: i32, %arg1: i32) -> (i32, i32) {
    %c0_i32 = arith.constant 0 : i32
    %c0_i32_0 = arith.constant 0 : i32
    %c0_i32_1 = arith.constant 0 : i32
    return %c0_i32, %c0_i32_0 : i32, i32
  }
  func.func @transform_3(%arg0: i32, %arg1: i32) -> (i32, i32) {
    %c0_i32 = arith.constant 0 : i32
    %c0_i32_0 = arith.constant 0 : i32
    return %c0_i32, %arg1 : i32, i32
  }
  func.func @transform_4(%arg0: i32, %arg1: i32) -> (i32, i32) {
    %c0_i32 = arith.constant 0 : i32
    %c0_i32_0 = arith.constant 0 : i32
    return %c0_i32, %arg1 : i32, i32
  }
  func.func @transform_5(%arg0: i32, %arg1: i32) -> (i32, i32) {
    %c0_i32 = arith.constant 0 : i32
    return %arg0, %arg1 : i32, i32
  }
}

</mosaic_0001>

<bundles_post_ra>
// kernel: prenorm_linear.1
= control target key start
LH: loop header
LB: loop body
LE: loop exit
PB: predicated region body
PF: predicated region fallthrough
CT: control target
= control target key end

     0   :  { %s617_s18 = smov 0   ;;  %s619_s19 = smov 0   ;;  %s682_s0 = inlined_call_operand.vmem [shape: f32[16,32], index: 0, kind: input, shape index: {}]   ;;  %s683_s1 = inlined_call_operand.vmem [shape: f32[1,32], index: 1, kind: input, shape index: {}]   ;;  %s684_s2 = inlined_call_operand.vmem [shape: f32[1,32], index: 2, kind: input, shape index: {}]   ;;  %s685_s3 = inlined_call_operand.vmem [shape: f32[32,128], index: 3, kind: input, shape index: {}]   ;;  %s686_s4 = inlined_call_operand.vmem [shape: f32[1,128], index: 4, kind: input, shape index: {}]   ;;  %s687_s5 = inlined_call_operand.vmem [shape: f32[16,128], index: 5, kind: output, shape index: {}]  }
   0x1   :  { %s621_s20 = smov 0  }
   0x2 LB: > { %s27_s21 = sadd.s32 1, %s578_s19  ;;  %p500_p0 = scmp.ge.s32.totalorder %s582_s20, 1  ;;  %s582_s20 = sphi %s621_s20, %s15_s20   ;;  %s578_s19 = sphi %s619_s19, %s689_s19   ;;  %s574_s18 = sphi %s617_s18, %s688_s18  }
   0x3   : > { %p29_p1 = scmp.ge.s32.totalorder %s27_s21, 2  ;;  %p217_p2 = scmp.lt.s32.totalorder %s582_s20, 3 }
   0x5   : > { %s691_s21 = smov (%p29_p1, %s27_s21), 0  ;;  %p218_p3 = pnand %p500_p0, %p217_p2 }
   0x6   : > { %p253_p4 = scmp.lt.s32.totalorder (!%p218_p3), %s574_s18, 1  ;;  %vm276_vm0 = vcmask (!%p218_p3), 261120   ;;  %v309_v7 = vld [vmem:[%s685_s3] sm:$0xff] (!%p218_p3)  ;;  %v310_v8 = vld [vmem:[%s685_s3 + $0x8] sm:$0xff] (!%p218_p3)  ;;  %v584_v10 = vmov (!%p218_p3), 0.0|0.0   ;;  %v311_v11 = vld [vmem:[%s685_s3 + $0x10] sm:$0xff] (!%p218_p3) }
   0x7   : > { %221 = sbr.rel (%p218_p3) target bundleno = 554 (0x22a), region = 40  ;;  %v526_v9 = vpack.c.bf16 (!%p218_p3), %v310_v8, %v309_v7  ;;  %525 = vmatprep.subr.bf16.mxu0 (!%p218_p3), %v584_v10  ;;  %v312_v12 = vld [vmem:[%s685_s3 + $0x18] sm:$0xff] (!%p218_p3)  ;;  %vm585_vm1 = vmmov (!%p218_p3), 0   ;;  %v586_v14 = vmov (!%p218_p3), 0.0   ;;  %v503_v19 = vld [vmem:[%s683_s1] ss:$0 sm:$0xff] (!%p218_p3) }
   0x8   : > { %v529_v13 = vpack.c.bf16 (!%p218_p3), %v312_v12, %v311_v11  ;;  %522 = vmatprep.mubr.msk.f32.mxu0 (!%p218_p3), %vm585_vm1, %v586_v14  ;;  %v504_v21 = vld [vmem:[%s684_s2] ss:$0 sm:$0xff] (!%p218_p3) }
   0x9   : > { %527 = vmatpush3.bf16.msra.mxu0 (!%p218_p3), %v526_v9  ;;  %v505_v25 = vld [vmem:[%s686_s4] ss:$0 sm:$0xff] (!%p218_p3) }
   0xa   : > { %528 = vmatprep.subr.bf16.mxu0 (!%p218_p3), %v584_v10 }
   0xd   : > { %530 = vmatpush3.bf16.msra.mxu0 (!%p218_p3), %v529_v13 }
   0xe   : > { %s693_s18 = smov (!%p253_p4, %s574_s18), 1 }
   0xf   : > { %s501_s22 = sshll.u32 %s693_s18, 3 }
  0x10   : > { %s256_s25 = scalar_lea.vmem %s682_s0, %s501_s22  ;;  %s270_s17 = scalar_lea.vmem %s687_s5, %s501_s22 }
  0x11   : > { %v275_v0 = vld [vmem:[%s256_s25] sm:$0xff] }
  0x12   : > { %v277_v1 = vsel %vm276_vm0, %v275_v0, 0.0 }
  0x13   : > { %278 = vadd.xlane.f32.xlu0 %v277_v1 }
  0xa0   : > { %v279_v2 = vpop.xlane.xlu0 %278 }
  0xa1   : > { %v281_v3 = vmul.f32 0.03125, %v279_v2 }
  0xa3   : > { %v282_v4 = vsub.f32 %v275_v0, %v281_v3 }
  0xa5   : > { %v283_v5 = vmul.f32 %v282_v4, %v282_v4 }
  0xa7   : > { %v284_v6 = vsel %vm276_vm0, %v283_v5, 0.0 }
  0xa8   : > { %285 = vadd.xlane.f32.xlu0 %v284_v6 }
 0x135   : > { %v286_v15 = vpop.xlane.xlu0 %285 }
 0x136   : > { %v287_v16 = vmul.f32 0.03125, %v286_v15 }
 0x138   : > { %v288_v17 = vadd.f32 1e-05, %v287_v16 }
 0x13a   : > { %558 = vrsqrt.f32 %v288_v17 }
 0x144   : > { %v559_v18 = vpop.eup %558 }
 0x145   : > { %v290_v20 = vmul.f32 %v559_v18, %v282_v4 }
 0x147   : > { %v298_v22 = vmul.f32 %v503_v19, %v290_v20 }
 0x149   : > { %v306_v23 = vadd.f32 %v504_v21, %v298_v22 }
 0x14b   : > { %307 = vst.msk [vmem:[#allocation2] sm:$0xff] %vm276_vm0, %v306_v23 }
 0x152   : > { %v308_v24 = vld [vmem:[#allocation2] sm:$0xff] }
 0x153   : > { %523 = vmatmul.mubr.msk.f32.vlgmr.msra.gmra.mrb[0].mxu0 %vm276_vm0, %v308_v24 }
 0x226   : > { %v390_v26 = vpop.f32.mrb[0].mxu0 }
 0x227   : > { %v391_v27 = vadd.f32 %v505_v25, %v390_v26  ;;  %v524_v28 = vpop.f32.mrb[1].mxu0 }
 0x229   : > { %394 = vst [vmem:[%s270_s17] sm:$0xff] %v391_v27 }
 0x22a PF: > { %s15_s20 = sadd.s32 1, %s582_s20   ;;  %s688_s18 = smov %s578_s19 }
 0x22b   : > { %p12_p5 = scmp.ge.s32.totalorder %s15_s20, 4   ;;  %s689_s19 = smov %s691_s21 }
 0x22d   :  { %14 = sbr.rel (!%p12_p5) target bundleno = 2 (0x2), region = 80 }

</bundles_post_ra>
